<compile_context>
chip_gen: v7x
topology: tpu7x:2x2x1
jax: 0.10.0
libtpu: 0.0.40
codegen_flags: <defaults>
</compile_context>

<pallas_src>
import jax
import jax.numpy as jnp
from jax.experimental import pallas as pl
from jax.experimental.pallas import tpu as pltpu


HIDDEN = 256  # fixed by the module definition
LANE = 128    # TPU lane width


def _round_up(n, m):
    return ((n + m - 1) // m) * m


def _qnet_kernel(x_ref, w1_ref, b1_ref, w2_ref, b2_ref, w3_ref, b3_ref, out_ref):
    """Fused 3-layer MLP: (matmul + bias + relu) x2, then matmul + bias.

    Matmuls accumulate in f32 on the MXU; bias add / ReLU stay in f32 on the VPU.
    """
    h1 = jnp.dot(x_ref[...], w1_ref[...], preferred_element_type=jnp.float32)
    h1 = jnp.maximum(h1 + b1_ref[...], 0.0)

    h2 = jnp.dot(h1.astype(w2_ref.dtype), w2_ref[...],
                 preferred_element_type=jnp.float32)
    h2 = jnp.maximum(h2 + b2_ref[...], 0.0)

    out = jnp.dot(h2.astype(w3_ref.dtype), w3_ref[...],
                  preferred_element_type=jnp.float32)
    out_ref[...] = (out + b3_ref[...]).astype(out_ref.dtype)


def qnet_forward(x, params, *, tile_b=None, compute_dtype=jnp.float32):
    """Run the fused Q_net forward pass.

    x: (B, state_space) float32
    params: dict with w1 (S,256), b1 (1,256), w2 (256,256), b2 (1,256),
            w3 (256,A), b3 (1,A)   (weights stored as (in, out))
    compute_dtype: dtype of the MXU operands (f32 exact; bf16 for v6e/v7x speed).
    """
    w1, b1 = params["w1"], params["b1"]
    w2, b2 = params["w2"], params["b2"]
    w3, b3 = params["w3"], params["b3"]

    B, S = x.shape
    A = w3.shape[1]

    # ---- Lane-pad first-layer K dim and last-layer N dim to 128 (zeros => exact) ----
    S_pad = _round_up(S, LANE)
    A_pad = _round_up(A, LANE)
    if S_pad != S:
        x = jnp.pad(x, ((0, 0), (0, S_pad - S)))
        w1 = jnp.pad(w1, ((0, S_pad - S), (0, 0)))
    if A_pad != A:
        w3 = jnp.pad(w3, ((0, 0), (0, A_pad - A)))
        b3 = jnp.pad(b3, ((0, 0), (0, A_pad - A)))

    # ---- Batch tiling: single grid step for small batches, <=512-row tiles otherwise ----
    if tile_b is None:
        tile_b = min(512, _round_up(B, 8))
    tile_b = max(8, _round_up(int(tile_b), 8))
    B_pad = _round_up(B, tile_b)
    if B_pad != B:
        x = jnp.pad(x, ((0, B_pad - B), (0, 0)))
    grid = (B_pad // tile_b,)

    # ---- MXU operand dtype (biases + elementwise stay f32, accumulation is f32) ----
    x = x.astype(compute_dtype)
    w1 = w1.astype(compute_dtype)
    w2 = w2.astype(compute_dtype)
    w3 = w3.astype(compute_dtype)
    b1 = b1.astype(jnp.float32)
    b2 = b2.astype(jnp.float32)
    b3 = b3.astype(jnp.float32)

    rep = lambda i: (0, 0)  # weights/biases fully resident across batch tiles

    out = pl.pallas_call(
        _qnet_kernel,
        out_shape=jax.ShapeDtypeStruct((B_pad, A_pad), jnp.float32),
        grid=grid,
        in_specs=[
            pl.BlockSpec((tile_b, S_pad), lambda i: (i, 0)),   # x batch tile
            pl.BlockSpec((S_pad, HIDDEN), rep),                # W1
            pl.BlockSpec((1, HIDDEN), rep),                    # b1
            pl.BlockSpec((HIDDEN, HIDDEN), rep),               # W2
            pl.BlockSpec((1, HIDDEN), rep),                    # b2
            pl.BlockSpec((HIDDEN, A_pad), rep),                # W3 (lane-padded)
            pl.BlockSpec((1, A_pad), rep),                     # b3 (lane-padded)
        ],
        out_specs=pl.BlockSpec((tile_b, A_pad), lambda i: (i, 0)),
        compiler_params=pltpu.CompilerParams(
            dimension_semantics=("parallel",),  # batch tiles shard across TCs (v7x)
        ),
    )(x, w1, b1, w2, b2, w3, b3)

    return out[:B, :A]


def init_qnet_params(key, state_space, action_space):
    """PyTorch nn.Linear default init: U(-1/sqrt(fan_in), 1/sqrt(fan_in))."""
    def linear_init(k, fan_in, fan_out):
        kw, kb = jax.random.split(k)
        bound = 1.0 / jnp.sqrt(float(fan_in))
        # stored as (in, out) so the kernel computes x @ W
        w = jax.random.uniform(kw, (fan_in, fan_out), jnp.float32, -bound, bound)
        b = jax.random.uniform(kb, (1, fan_out), jnp.float32, -bound, bound)
        return w, b

    k1, k2, k3 = jax.random.split(key, 3)
    w1, b1 = linear_init(k1, state_space, HIDDEN)
    w2, b2 = linear_init(k2, HIDDEN, HIDDEN)
    w3, b3 = linear_init(k3, HIDDEN, action_space)
    return {"w1": w1, "b1": b1, "w2": w2, "b2": b2, "w3": w3, "b3": b3}


def qnet_forward_ref(x, params):
    """Pure-JAX f32 reference for correctness checking."""
    h1 = jnp.maximum(x @ params["w1"] + params["b1"], 0.0)
    h2 = jnp.maximum(h1 @ params["w2"] + params["b2"], 0.0)
    return h2 @ params["w3"] + params["b3"]


if __name__ == "__main__":
    key = jax.random.PRNGKey(0)
    k_param, k_x1, k_x2, k_x3 = jax.random.split(key, 4)

    state_space = 16
    action_space = 4

    params = init_qnet_params(k_param, state_space, action_space)

    fwd_f32 = jax.jit(lambda xx, pp: qnet_forward(xx, pp))
    fwd_bf16 = jax.jit(lambda xx, pp: qnet_forward(xx, pp, compute_dtype=jnp.bfloat16))

    # --- small batch, exact f32 path (single grid step) ---
    x8 = jax.random.normal(k_x1, (8, state_space), jnp.float32)
    out8 = jax.block_until_ready(fwd_f32(x8, params))
    ref8 = qnet_forward_ref(x8, params)
    assert out8.shape == (8, action_space)
    assert jnp.allclose(out8, ref8, atol=1e-4, rtol=1e-4), "f32 mismatch vs reference"

    # --- non-divisible batch size (padding path) ---
    x10 = jax.random.normal(k_x2, (10, state_space), jnp.float32)
    out10 = jax.block_until_ready(fwd_f32(x10, params))
    ref10 = qnet_forward_ref(x10, params)
    assert out10.shape == (10, action_space)
    assert jnp.allclose(out10, ref10, atol=1e-4, rtol=1e-4), "f32 (padded B) mismatch"

    # --- larger batch, multiple grid steps (tile_b forces >1 step) ---
    x1k = jax.random.normal(k_x3, (1024, state_space), jnp.float32)
    out1k = jax.block_until_ready(
        jax.jit(lambda xx, pp: qnet_forward(xx, pp, tile_b=256))(x1k, params))
    ref1k = qnet_forward_ref(x1k, params)
    assert out1k.shape == (1024, action_space)
    assert jnp.allclose(out1k, ref1k, atol=1e-4, rtol=1e-4), "f32 (multi-tile) mismatch"

    # --- bf16 MXU operands (v6e/v7x fast path), f32 accumulation ---
    out_bf16 = jax.block_until_ready(fwd_bf16(x8, params))
    assert out_bf16.shape == (8, action_space)
    assert jnp.allclose(out_bf16, ref8, atol=3e-2, rtol=3e-2), "bf16 mismatch"

    print("KERNEL_OK")
</pallas_src>

<mosaic_0001>
module attributes {stable_mosaic.version = 11 : i64} {
  func.func @_qnet_kernel(%arg0: i32, %arg1: memref<8x128xf32, #tpu.memory_space<vmem>>, %arg2: memref<128x256xf32, #tpu.memory_space<vmem>>, %arg3: memref<1x256xf32, #tpu.memory_space<vmem>>, %arg4: memref<256x256xf32, #tpu.memory_space<vmem>>, %arg5: memref<1x256xf32, #tpu.memory_space<vmem>>, %arg6: memref<256x128xf32, #tpu.memory_space<vmem>>, %arg7: memref<1x128xf32, #tpu.memory_space<vmem>>, %arg8: memref<8x128xf32, #tpu.memory_space<vmem>>) attributes {dimension_semantics = [#tpu.dimension_semantics<parallel>], iteration_bounds = array<i64: 1>, scalar_prefetch = 0 : i64, scratch_operands = 0 : i64, tpu.core_type = #tpu.core_type<tc>, window_params = [{transform_indices = @transform_0, window_bounds = array<i64: 8, 128>}, {pipeline_mode = #tpu.pipeline_mode<synchronous>, transform_indices = @transform_1, window_bounds = array<i64: 128, 256>}, {pipeline_mode = #tpu.pipeline_mode<synchronous>, transform_indices = @transform_2, window_bounds = array<i64: 1, 256>}, {pipeline_mode = #tpu.pipeline_mode<synchronous>, transform_indices = @transform_3, window_bounds = array<i64: 256, 256>}, {pipeline_mode = #tpu.pipeline_mode<synchronous>, transform_indices = @transform_4, window_bounds = array<i64: 1, 256>}, {pipeline_mode = #tpu.pipeline_mode<synchronous>, transform_indices = @transform_5, window_bounds = array<i64: 256, 128>}, {pipeline_mode = #tpu.pipeline_mode<synchronous>, transform_indices = @transform_6, window_bounds = array<i64: 1, 128>}, {transform_indices = @transform_7, window_bounds = array<i64: 8, 128>}]} {
    %c0 = arith.constant 0 : index
    %c0_0 = arith.constant 0 : index
    %0 = vector.load %arg1[%c0, %c0_0] : memref<8x128xf32, #tpu.memory_space<vmem>>, vector<8x128xf32>
    %c0_1 = arith.constant 0 : index
    %c0_2 = arith.constant 0 : index
    %1 = vector.load %arg2[%c0_1, %c0_2] : memref<128x256xf32, #tpu.memory_space<vmem>>, vector<128x256xf32>
    %cst = arith.constant dense<0.000000e+00> : vector<8x256xf32>
    %2 = tpu.matmul %0, %1, %cst {dimension_numbers = #tpu.dot_dimension_numbers<[1], [0], [0], [1], [0, 0, 1, 1], [], []>} : vector<8x128xf32>, vector<128x256xf32>, vector<8x256xf32> -> vector<8x256xf32>
    %c0_3 = arith.constant 0 : index
    %c0_4 = arith.constant 0 : index
    %3 = vector.load %arg3[%c0_3, %c0_4] : memref<1x256xf32, #tpu.memory_space<vmem>>, vector<1x256xf32>
    %4 = vector.broadcast %3 : vector<1x256xf32> to vector<8x256xf32>
    %5 = arith.addf %2, %4 : vector<8x256xf32>
    %cst_5 = arith.constant 0.000000e+00 : f32
    %6 = vector.broadcast %cst_5 : f32 to vector<8x256xf32>
    %7 = arith.maximumf %5, %6 : vector<8x256xf32>
    %c0_6 = arith.constant 0 : index
    %c0_7 = arith.constant 0 : index
    %8 = vector.load %arg4[%c0_6, %c0_7] : memref<256x256xf32, #tpu.memory_space<vmem>>, vector<256x256xf32>
    %cst_8 = arith.constant dense<0.000000e+00> : vector<8x256xf32>
    %9 = tpu.matmul %7, %8, %cst_8 {dimension_numbers = #tpu.dot_dimension_numbers<[1], [0], [0], [1], [0, 0, 1, 1], [], []>} : vector<8x256xf32>, vector<256x256xf32>, vector<8x256xf32> -> vector<8x256xf32>
    %c0_9 = arith.constant 0 : index
    %c0_10 = arith.constant 0 : index
    %10 = vector.load %arg5[%c0_9, %c0_10] : memref<1x256xf32, #tpu.memory_space<vmem>>, vector<1x256xf32>
    %11 = vector.broadcast %10 : vector<1x256xf32> to vector<8x256xf32>
    %12 = arith.addf %9, %11 : vector<8x256xf32>
    %cst_11 = arith.constant 0.000000e+00 : f32
    %13 = vector.broadcast %cst_11 : f32 to vector<8x256xf32>
    %14 = arith.maximumf %12, %13 : vector<8x256xf32>
    %c0_12 = arith.constant 0 : index
    %c0_13 = arith.constant 0 : index
    %15 = vector.load %arg6[%c0_12, %c0_13] : memref<256x128xf32, #tpu.memory_space<vmem>>, vector<256x128xf32>
    %cst_14 = arith.constant dense<0.000000e+00> : vector<8x128xf32>
    %16 = tpu.matmul %14, %15, %cst_14 {dimension_numbers = #tpu.dot_dimension_numbers<[1], [0], [0], [1], [0, 0, 1, 1], [], []>} : vector<8x256xf32>, vector<256x128xf32>, vector<8x128xf32> -> vector<8x128xf32>
    %c0_15 = arith.constant 0 : index
    %c0_16 = arith.constant 0 : index
    %17 = vector.load %arg7[%c0_15, %c0_16] : memref<1x128xf32, #tpu.memory_space<vmem>>, vector<1x128xf32>
    %18 = vector.broadcast %17 : vector<1x128xf32> to vector<8x128xf32>
    %19 = arith.addf %16, %18 : vector<8x128xf32>
    %c0_17 = arith.constant 0 : index
    %c0_18 = arith.constant 0 : index
    %20 = vector.load %arg8[%c0_17, %c0_18] : memref<8x128xf32, #tpu.memory_space<vmem>>, vector<8x128xf32>
    tpu.vector_store %arg8[%c0_17, %c0_18], %19 {strides = array<i32>} : memref<8x128xf32, #tpu.memory_space<vmem>>, vector<8x128xf32>,
    return
  }
  func.func @transform_0(%arg0: i32) -> (i32, i32) {
    %c0_i32 = arith.constant 0 : i32
    %c0_i32_0 = arith.constant 0 : i32
    return %arg0, %c0_i32 : i32, i32
  }
  func.func @transform_1(%arg0: i32) -> (i32, i32) {
    %c0_i32 = arith.constant 0 : i32
    %c0_i32_0 = arith.constant 0 : i32
    %c0_i32_1 = arith.constant 0 : i32
    return %c0_i32, %c0_i32_0 : i32, i32
  }
  func.func @transform_2(%arg0: i32) -> (i32, i32) {
    %c0_i32 = arith.constant 0 : i32
    %c0_i32_0 = arith.constant 0 : i32
    %c0_i32_1 = arith.constant 0 : i32
    return %c0_i32, %c0_i32_0 : i32, i32
  }
  func.func @transform_3(%arg0: i32) -> (i32, i32) {
    %c0_i32 = arith.constant 0 : i32
    %c0_i32_0 = arith.constant 0 : i32
    %c0_i32_1 = arith.constant 0 : i32
    return %c0_i32, %c0_i32_0 : i32, i32
  }
  func.func @transform_4(%arg0: i32) -> (i32, i32) {
    %c0_i32 = arith.constant 0 : i32
    %c0_i32_0 = arith.constant 0 : i32
    %c0_i32_1 = arith.constant 0 : i32
    return %c0_i32, %c0_i32_0 : i32, i32
  }
  func.func @transform_5(%arg0: i32) -> (i32, i32) {
    %c0_i32 = arith.constant 0 : i32
    %c0_i32_0 = arith.constant 0 : i32
    %c0_i32_1 = arith.constant 0 : i32
    return %c0_i32, %c0_i32_0 : i32, i32
  }
  func.func @transform_6(%arg0: i32) -> (i32, i32) {
    %c0_i32 = arith.constant 0 : i32
    %c0_i32_0 = arith.constant 0 : i32
    %c0_i32_1 = arith.constant 0 : i32
    return %c0_i32, %c0_i32_0 : i32, i32
  }
  func.func @transform_7(%arg0: i32) -> (i32, i32) {
    %c0_i32 = arith.constant 0 : i32
    %c0_i32_0 = arith.constant 0 : i32
    return %arg0, %c0_i32 : i32, i32
  }
}

</mosaic_0001>

<bundles_post_ra>
// kernel: _lambda_.1
= control target key start
LH: loop header
LB: loop body
LE: loop exit
PB: predicated region body
PF: predicated region fallthrough
CT: control target
= control target key end

     0   :  { %v572_v3 = vmov 0.0   ;;  %s1012_s1 = inlined_call_operand.vmem [shape: f32[128,256], index: 1, kind: input, shape index: {}]   ;;  %s1013_s3 = inlined_call_operand.vmem [shape: f32[256,256], index: 3, kind: input, shape index: {}]   ;;  %s1014_s0 = inlined_call_operand.vmem [shape: f32[8,128], index: 0, kind: input, shape index: {}]   ;;  %s1015_s5 = inlined_call_operand.vmem [shape: f32[256,128], index: 5, kind: input, shape index: {}]   ;;  %s1016_s2 = inlined_call_operand.vmem [shape: f32[1,256], index: 2, kind: input, shape index: {}]   ;;  %s1017_s4 = inlined_call_operand.vmem [shape: f32[1,256], index: 4, kind: input, shape index: {}]   ;;  %s1018_s6 = inlined_call_operand.vmem [shape: f32[1,128], index: 6, kind: input, shape index: {}]   ;;  %s1019_s7 = inlined_call_operand.vmem [shape: f32[8,128], index: 7, kind: output, shape index: {}]  }
   0x1   :  { %v28_v0 = vld [vmem:[%s1012_s1 + $0x8] sm:$0xff]  ;;  %v30_v1 = vld [vmem:[%s1012_s1 + $0x18] sm:$0xff]  ;;  %v27_v2 = vld [vmem:[%s1012_s1] sm:$0xff]  ;;  %135 = vmatprep.mubr.f32.mxu0 %v572_v3 }
   0x2   :  { %v443_v4 = vpack.c.bf16 %v30_v1, %v28_v0  ;;  %v29_v5 = vld [vmem:[%s1012_s1 + $0x10] sm:$0xff]  ;;  %v32_v6 = vld [vmem:[%s1012_s1 + $0x28] sm:$0xff]  ;;  %v34_v7 = vld [vmem:[%s1012_s1 + $0x38] sm:$0xff] }
   0x3   :  { %v445_v8 = vpack.c.bf16 %v29_v5, %v27_v2  ;;  %v447_v9 = vpack.c.bf16 %v34_v7, %v32_v6  ;;  %v31_v10 = vld [vmem:[%s1012_s1 + $0x20] sm:$0xff]  ;;  %v33_v11 = vld [vmem:[%s1012_s1 + $0x30] sm:$0xff]  ;;  %v36_v12 = vld [vmem:[%s1012_s1 + $0x48] sm:$0xff] }
   0x4   :  { %444 = vmatprep.subr.bf16.mxu0 %v443_v4  ;;  %v38_v13 = vld [vmem:[%s1012_s1 + $0x58] sm:$0xff]  ;;  %v449_v14 = vpack.c.bf16 %v33_v11, %v31_v10  ;;  %v35_v16 = vld [vmem:[%s1012_s1 + $0x40] sm:$0xff]  ;;  %v37_v17 = vld [vmem:[%s1012_s1 + $0x50] sm:$0xff] }
   0x5   :  { %446 = vmatpush1.bf16.msra.mxu0 %v445_v8  ;;  %v451_v15 = vpack.c.bf16 %v38_v13, %v36_v12  ;;  %v40_v18 = vld [vmem:[%s1012_s1 + $0x68] sm:$0xff]  ;;  %v42_v19 = vld [vmem:[%s1012_s1 + $0x78] sm:$0xff]  ;;  %v453_v20 = vpack.c.bf16 %v37_v17, %v35_v16  ;;  %v39_v22 = vld [vmem:[%s1012_s1 + $0x60] sm:$0xff] }
   0x6   :  { %448 = vmatprep.subr.bf16.mxu0 %v447_v9  ;;  %v455_v21 = vpack.c.bf16 %v42_v19, %v40_v18  ;;  %v41_v23 = vld [vmem:[%s1012_s1 + $0x70] sm:$0xff]  ;;  %v44_v24 = vld [vmem:[%s1012_s1 + $0x88] sm:$0xff]  ;;  %v46_v25 = vld [vmem:[%s1012_s1 + $0x98] sm:$0xff] }
   0x7   :  { %v43_v26 = vld [vmem:[%s1012_s1 + $0x80] sm:$0xff]  ;;  %v45_v27 = vld [vmem:[%s1012_s1 + $0x90] sm:$0xff]  ;;  %v145_v28 = vld [vmem:[%s1013_s3 + $0x8] sm:$0xff]  ;;  %v457_v31 = vpack.c.bf16 %v41_v23, %v39_v22  ;;  %v459_v36 = vpack.c.bf16 %v46_v25, %v44_v24 }
   0x8   :  { %v147_v29 = vld [vmem:[%s1013_s3 + $0x18] sm:$0xff]  ;;  %v144_v30 = vld [vmem:[%s1013_s3] sm:$0xff]  ;;  %v146_v33 = vld [vmem:[%s1013_s3 + $0x10] sm:$0xff]  ;;  %v461_v46 = vpack.c.bf16 %v45_v27, %v43_v26 }
   0x9   :  { %450 = vmatpush1.bf16.msra.mxu0 %v449_v14  ;;  %v475_v32 = vpack.c.bf16 %v147_v29, %v145_v28  ;;  %v149_v34 = vld [vmem:[%s1013_s3 + $0x28] sm:$0xff]  ;;  %v151_v35 = vld [vmem:[%s1013_s3 + $0x38] sm:$0xff]  ;;  %v477_v37 = vpack.c.bf16 %v146_v33, %v144_v30  ;;  %v148_v39 = vld [vmem:[%s1013_s3 + $0x20] sm:$0xff] }
   0xa   :  { %452 = vmatprep.subr.bf16.mxu0 %v451_v15  ;;  %v479_v38 = vpack.c.bf16 %v151_v35, %v149_v34  ;;  %v150_v40 = vld [vmem:[%s1013_s3 + $0x30] sm:$0xff]  ;;  %v153_v41 = vld [vmem:[%s1013_s3 + $0x48] sm:$0xff]  ;;  %v50_v43 = vld [vmem:[%s1012_s1 + $0xb8] sm:$0xff] }
   0xb   :  { %v48_v42 = vld [vmem:[%s1012_s1 + $0xa8] sm:$0xff]  ;;  %476 = vmatprep.subr.bf16.mxu1 %v475_v32  ;;  %v155_v44 = vld [vmem:[%s1013_s3 + $0x58] sm:$0xff]  ;;  %v481_v45 = vpack.c.bf16 %v150_v40, %v148_v39  ;;  %v47_v47 = vld [vmem:[%s1012_s1 + $0xa0] sm:$0xff] }
   0xc   :  { %478 = vmatpush1.bf16.msra.mxu1 %v477_v37  ;;  %v483_v48 = vpack.c.bf16 %v155_v44, %v153_v41  ;;  %v152_v49 = vld [vmem:[%s1013_s3 + $0x40] sm:$0xff]  ;;  %v154_v50 = vld [vmem:[%s1013_s3 + $0x50] sm:$0xff]  ;;  %v463_v51 = vpack.c.bf16 %v50_v43, %v48_v42  ;;  %v157_v53 = vld [vmem:[%s1013_s3 + $0x68] sm:$0xff] }
   0xd   :  { %454 = vmatpush1.bf16.msra.mxu0 %v453_v20  ;;  %480 = vmatprep.subr.bf16.mxu1 %v479_v38  ;;  %v49_v52 = vld [vmem:[%s1012_s1 + $0xb0] sm:$0xff]  ;;  %v159_v54 = vld [vmem:[%s1013_s3 + $0x78] sm:$0xff]  ;;  %v52_v55 = vld [vmem:[%s1012_s1 + $0xc8] sm:$0xff]  ;;  %v485_v57 = vpack.c.bf16 %v154_v50, %v152_v49 }
   0xe   :  { %456 = vmatprep.subr.bf16.mxu0 %v455_v21  ;;  %v54_v56 = vld [vmem:[%s1012_s1 + $0xd8] sm:$0xff]  ;;  %v465_v58 = vpack.c.bf16 %v49_v52, %v47_v47  ;;  %v51_v59 = vld [vmem:[%s1012_s1 + $0xc0] sm:$0xff]  ;;  %v487_v60 = vpack.c.bf16 %v159_v54, %v157_v53  ;;  %v158_v62 = vld [vmem:[%s1013_s3 + $0x70] sm:$0xff] }
   0xf   :  { %v156_v61 = vld [vmem:[%s1013_s3 + $0x60] sm:$0xff]  ;;  %v467_v63 = vpack.c.bf16 %v54_v56, %v52_v55  ;;  %v53_v0 = vld [vmem:[%s1012_s1 + $0xd0] sm:$0xff]  ;;  %v161_v1 = vld [vmem:[%s1013_s3 + $0x88] sm:$0xff] }
  0x10   :  { %482 = vmatpush1.bf16.msra.mxu1 %v481_v45  ;;  %v163_v2 = vld [vmem:[%s1013_s3 + $0x98] sm:$0xff]  ;;  %v56_v3 = vld [vmem:[%s1012_s1 + $0xe8] sm:$0xff]  ;;  %v489_v5 = vpack.c.bf16 %v158_v62, %v156_v61  ;;  %v469_v6 = vpack.c.bf16 %v53_v0, %v51_v59  ;;  %v55_v7 = vld [vmem:[%s1012_s1 + $0xe0] sm:$0xff] }
  0x11   :  { %458 = vmatpush1.bf16.msra.mxu0 %v457_v31  ;;  %484 = vmatprep.subr.bf16.mxu1 %v483_v48  ;;  %v58_v4 = vld [vmem:[%s1012_s1 + $0xf8] sm:$0xff]  ;;  %v491_v8 = vpack.c.bf16 %v163_v2, %v161_v1  ;;  %v160_v9 = vld [vmem:[%s1013_s3 + $0x80] sm:$0xff]  ;;  %v162_v10 = vld [vmem:[%s1013_s3 + $0x90] sm:$0xff] }
  0x12   :  { %460 = vmatprep.subr.bf16.mxu0 %v459_v36  ;;  %v471_v11 = vpack.c.bf16 %v58_v4, %v56_v3  ;;  %v57_v12 = vld [vmem:[%s1012_s1 + $0xf0] sm:$0xff]  ;;  %v165_v13 = vld [vmem:[%s1013_s3 + $0xa8] sm:$0xff]  ;;  %v167_v14 = vld [vmem:[%s1013_s3 + $0xb8] sm:$0xff]  ;;  %v493_v15 = vpack.c.bf16 %v162_v10, %v160_v9 }
  0x13   :  { %v473_v16 = vpack.c.bf16 %v57_v12, %v55_v7  ;;  %v495_v17 = vpack.c.bf16 %v167_v14, %v165_v13  ;;  %v164_v18 = vld [vmem:[%s1013_s3 + $0xa0] sm:$0xff]  ;;  %v166_v19 = vld [vmem:[%s1013_s3 + $0xb0] sm:$0xff]  ;;  %v169_v20 = vld [vmem:[%s1013_s3 + $0xc8] sm:$0xff] }
  0x14   :  { %486 = vmatpush1.bf16.msra.mxu1 %v485_v57  ;;  %v171_v21 = vld [vmem:[%s1013_s3 + $0xd8] sm:$0xff]  ;;  %v497_v22 = vpack.c.bf16 %v166_v19, %v164_v18  ;;  %v26_v23 = vld [vmem:[%s1014_s0] sm:$0xff]  ;;  %v170_v26 = vld [vmem:[%s1013_s3 + $0xd0] sm:$0xff] }
  0x15   :  { %462 = vmatpush1.bf16.msra.mxu0 %v461_v46  ;;  %488 = vmatprep.subr.bf16.mxu1 %v487_v60  ;;  %v499_v24 = vpack.c.bf16 %v171_v21, %v169_v20  ;;  %v168_v25 = vld [vmem:[%s1013_s3 + $0xc0] sm:$0xff]  ;;  %v173_v27 = vld [vmem:[%s1013_s3 + $0xe8] sm:$0xff]  ;;  %v175_v28 = vld [vmem:[%s1013_s3 + $0xf8] sm:$0xff] }
  0x16   :  { %464 = vmatprep.subr.bf16.mxu0 %v463_v51  ;;  %v501_v29 = vpack.c.bf16 %v170_v26, %v168_v25  ;;  %v503_v30 = vpack.c.bf16 %v175_v28, %v173_v27  ;;  %v172_v31 = vld [vmem:[%s1013_s3 + $0xe0] sm:$0xff]  ;;  %v174_v32 = vld [vmem:[%s1013_s3 + $0xf0] sm:$0xff]  ;;  %v177_v33 = vld [vmem:[%s1013_s3 + $0x108] sm:$0xff] }
  0x17   :  { %v179_v34 = vld [vmem:[%s1013_s3 + $0x118] sm:$0xff]  ;;  %v505_v35 = vpack.c.bf16 %v174_v32, %v172_v31  ;;  %v176_v37 = vld [vmem:[%s1013_s3 + $0x100] sm:$0xff]  ;;  %v178_v38 = vld [vmem:[%s1013_s3 + $0x110] sm:$0xff] }
  0x18   :  { %490 = vmatpush1.bf16.msra.mxu1 %v489_v5  ;;  %v507_v36 = vpack.c.bf16 %v179_v34, %v177_v33  ;;  %v181_v39 = vld [vmem:[%s1013_s3 + $0x128] sm:$0xff]  ;;  %v183_v40 = vld [vmem:[%s1013_s3 + $0x138] sm:$0xff]  ;;  %v509_v41 = vpack.c.bf16 %v178_v38, %v176_v37  ;;  %v180_v43 = vld [vmem:[%s1013_s3 + $0x120] sm:$0xff] }
  0x19   :  { %466 = vmatpush1.bf16.msra.mxu0 %v465_v58  ;;  %492 = vmatprep.subr.bf16.mxu1 %v491_v8  ;;  %v511_v42 = vpack.c.bf16 %v183_v40, %v181_v39  ;;  %v182_v44 = vld [vmem:[%s1013_s3 + $0x130] sm:$0xff]  ;;  %v185_v45 = vld [vmem:[%s1013_s3 + $0x148] sm:$0xff]  ;;  %v187_v46 = vld [vmem:[%s1013_s3 + $0x158] sm:$0xff] }
  0x1a   :  { %468 = vmatprep.subr.bf16.mxu0 %v467_v63  ;;  %v513_v47 = vpack.c.bf16 %v182_v44, %v180_v43  ;;  %v515_v48 = vpack.c.bf16 %v187_v46, %v185_v45  ;;  %v184_v49 = vld [vmem:[%s1013_s3 + $0x140] sm:$0xff]  ;;  %v186_v50 = vld [vmem:[%s1013_s3 + $0x150] sm:$0xff]  ;;  %v189_v51 = vld [vmem:[%s1013_s3 + $0x168] sm:$0xff] }
  0x1b   :  { %v191_v52 = vld [vmem:[%s1013_s3 + $0x178] sm:$0xff]  ;;  %v517_v53 = vpack.c.bf16 %v186_v50, %v184_v49  ;;  %v188_v55 = vld [vmem:[%s1013_s3 + $0x160] sm:$0xff]  ;;  %v190_v56 = vld [vmem:[%s1013_s3 + $0x170] sm:$0xff] }
  0x1c   :  { %494 = vmatpush1.bf16.msra.mxu1 %v493_v15  ;;  %v519_v54 = vpack.c.bf16 %v191_v52, %v189_v51  ;;  %v193_v57 = vld [vmem:[%s1013_s3 + $0x188] sm:$0xff]  ;;  %v195_v58 = vld [vmem:[%s1013_s3 + $0x198] sm:$0xff]  ;;  %v521_v59 = vpack.c.bf16 %v190_v56, %v188_v55  ;;  %v192_v61 = vld [vmem:[%s1013_s3 + $0x180] sm:$0xff] }
  0x1d   :  { %470 = vmatpush1.bf16.msra.mxu0 %v469_v6  ;;  %496 = vmatprep.subr.bf16.mxu1 %v495_v17  ;;  %v523_v60 = vpack.c.bf16 %v195_v58, %v193_v57  ;;  %v194_v62 = vld [vmem:[%s1013_s3 + $0x190] sm:$0xff]  ;;  %v197_v63 = vld [vmem:[%s1013_s3 + $0x1a8] sm:$0xff]  ;;  %v199_v0 = vld [vmem:[%s1013_s3 + $0x1b8] sm:$0xff]  ;;  %v61_v57 = vlaneseq }
  0x1e   :  { %472 = vmatprep.subr.bf16.mxu0 %v471_v11  ;;  %v525_v1 = vpack.c.bf16 %v194_v62, %v192_v61  ;;  %v527_v2 = vpack.c.bf16 %v199_v0, %v197_v63  ;;  %v196_v3 = vld [vmem:[%s1013_s3 + $0x1a0] sm:$0xff]  ;;  %v198_v4 = vld [vmem:[%s1013_s3 + $0x1b0] sm:$0xff]  ;;  %v201_v5 = vld [vmem:[%s1013_s3 + $0x1c8] sm:$0xff] }
  0x1f   :  { %v203_v6 = vld [vmem:[%s1013_s3 + $0x1d8] sm:$0xff]  ;;  %v529_v7 = vpack.c.bf16 %v198_v4, %v196_v3  ;;  %v200_v9 = vld [vmem:[%s1013_s3 + $0x1c0] sm:$0xff]  ;;  %v202_v10 = vld [vmem:[%s1013_s3 + $0x1d0] sm:$0xff]  ;;  %v62_v58 = vshrl.u32 %v61_v57, 7 }
  0x20   :  { %498 = vmatpush1.bf16.msra.mxu1 %v497_v22  ;;  %v531_v8 = vpack.c.bf16 %v203_v6, %v201_v5  ;;  %v533_v11 = vpack.c.bf16 %v202_v10, %v200_v9  ;;  %v205_v12 = vld [vmem:[%s1013_s3 + $0x1e8] sm:$0xff]  ;;  %v207_v13 = vld [vmem:[%s1013_s3 + $0x1f8] sm:$0xff]  ;;  %v204_v15 = vld [vmem:[%s1013_s3 + $0x1e0] sm:$0xff] }
  0x21   :  { %474 = vmatpush1.bf16.msra.mxu0 %v473_v16  ;;  %500 = vmatprep.subr.bf16.mxu1 %v499_v24  ;;  %v535_v14 = vpack.c.bf16 %v207_v13, %v205_v12  ;;  %v206_v16 = vld [vmem:[%s1013_s3 + $0x1f0] sm:$0xff]  ;;  %v309_v18 = vld [vmem:[%s1015_s5 + $0x80] sm:$0xff]  ;;  %v310_v19 = vld [vmem:[%s1015_s5 + $0x88] sm:$0xff]  ;;  %v67_v61 = vsub.s32 1, %v62_v58 }
  0x22   :  { %v537_v17 = vpack.c.bf16 %v206_v16, %v204_v15  ;;  %v293_v20 = vld [vmem:[%s1015_s5] sm:$0xff]  ;;  %v539_v21 = vpack.c.bf16 %v310_v19, %v309_v18  ;;  %v294_v22 = vld [vmem:[%s1015_s5 + $0x8] sm:$0xff]  ;;  %v312_v24 = vld [vmem:[%s1015_s5 + $0x98] sm:$0xff] }
  0x23   :  { %v541_v25 = vpack.c.bf16 %v294_v22, %v293_v20  ;;  %v295_v27 = vld [vmem:[%s1015_s5 + $0x10] sm:$0xff]  ;;  %v296_v28 = vld [vmem:[%s1015_s5 + $0x18] sm:$0xff]  ;;  %v297_v33 = vld [vmem:[%s1015_s5 + $0x20] sm:$0xff] }
  0x24   :  { %136 = vmatmul.mubr.f32.vlgmr.msra.gmra.mrb[0].mxu0 %v26_v23  ;;  %502 = vmatpush1.bf16.msra.mxu1 %v501_v29  ;;  %v311_v23 = vld [vmem:[%s1015_s5 + $0x90] sm:$0xff]  ;;  %v313_v29 = vld [vmem:[%s1015_s5 + $0xa0] sm:$0xff]  ;;  %v545_v31 = vpack.c.bf16 %v296_v28, %v295_v27  ;;  %v298_v34 = vld [vmem:[%s1015_s5 + $0x28] sm:$0xff] }
  0x25   :  { %504 = vmatprep.subr.bf16.mxu1 %v503_v30  ;;  %v543_v26 = vpack.c.bf16 %v312_v24, %v311_v23  ;;  %540 = vmatprep.subr.bf16.mxu0 %v539_v21  ;;  %v314_v30 = vld [vmem:[%s1015_s5 + $0xa8] sm:$0xff]  ;;  %v549_v37 = vpack.c.bf16 %v298_v34, %v297_v33  ;;  %v299_v39 = vld [vmem:[%s1015_s5 + $0x30] sm:$0xff]  ;;  %v300_v40 = vld [vmem:[%s1015_s5 + $0x38] sm:$0xff] }
  0x26   :  { %542 = vmatpush3.bf16.msra.mxu0 %v541_v25  ;;  %v547_v32 = vpack.c.bf16 %v314_v30, %v313_v29  ;;  %v553_v43 = vpack.c.bf16 %v300_v40, %v299_v39  ;;  %v301_v45 = vld [vmem:[%s1015_s5 + $0x40] sm:$0xff]  ;;  %v302_v46 = vld [vmem:[%s1015_s5 + $0x48] sm:$0xff]  ;;  %v303_v51 = vld [vmem:[%s1015_s5 + $0x50] sm:$0xff] }
  0x27   :  { %544 = vmatprep.subr.bf16.mxu0 %v543_v26  ;;  %v557_v49 = vpack.c.bf16 %v302_v46, %v301_v45  ;;  %v304_v52 = vld [vmem:[%s1015_s5 + $0x58] sm:$0xff]  ;;  %v305_v6 = vld [vmem:[%s1015_s5 + $0x60] sm:$0xff]  ;;  %v323_v9 = vld [vmem:[%s1015_s5 + $0xf0] sm:$0xff] }
  0x28   :  { %506 = vmatpush1.bf16.msra.mxu1 %v505_v35  ;;  %v315_v35 = vld [vmem:[%s1015_s5 + $0xb0] sm:$0xff]  ;;  %v561_v55 = vpack.c.bf16 %v304_v52, %v303_v51  ;;  %v324_v10 = vld [vmem:[%s1015_s5 + $0xf8] sm:$0xff]  ;;  %v208_v15 = vld [vmem:[%s1017_s4] sm:$0x3] }
  0x29   :  { %508 = vmatprep.subr.bf16.mxu1 %v507_v36  ;;  %v316_v36 = vld [vmem:[%s1015_s5 + $0xb8] sm:$0xff]  ;;  %v307_v12 = vld [vmem:[%s1015_s5 + $0x70] sm:$0xff]  ;;  %v407_v25 = vld [vmem:[%s1018_s6] ss:$0 sm:$0xff] }
  0x2a   :  { %546 = vmatpush3.bf16.msra.mxu0 %v545_v31  ;;  %v551_v38 = vpack.c.bf16 %v316_v36, %v315_v35  ;;  %v308_v13 = vld [vmem:[%s1015_s5 + $0x78] sm:$0xff] }
  0x2b   :  { %548 = vmatprep.subr.bf16.mxu0 %v547_v32 }
  0x2c   :  { %510 = vmatpush1.bf16.msra.mxu1 %v509_v41  ;;  %v317_v41 = vld [vmem:[%s1015_s5 + $0xc0] sm:$0xff] }
  0x2d   :  { %512 = vmatprep.subr.bf16.mxu1 %v511_v42  ;;  %v318_v42 = vld [vmem:[%s1015_s5 + $0xc8] sm:$0xff] }
  0x2e   :  { %550 = vmatpush3.bf16.msra.mxu0 %v549_v37  ;;  %v555_v44 = vpack.c.bf16 %v318_v42, %v317_v41 }
  0x2f   :  { %552 = vmatprep.subr.bf16.mxu0 %v551_v38 }
  0x30   :  { %514 = vmatpush1.bf16.msra.mxu1 %v513_v47  ;;  %v319_v47 = vld [vmem:[%s1015_s5 + $0xd0] sm:$0xff] }
  0x31   :  { %516 = vmatprep.subr.bf16.mxu1 %v515_v48  ;;  %v320_v48 = vld [vmem:[%s1015_s5 + $0xd8] sm:$0xff] }
  0x32   :  { %554 = vmatpush3.bf16.msra.mxu0 %v553_v43  ;;  %v559_v50 = vpack.c.bf16 %v320_v48, %v319_v47 }
  0x33   :  { %556 = vmatprep.subr.bf16.mxu0 %v555_v44 }
  0x34   :  { %518 = vmatpush1.bf16.msra.mxu1 %v517_v53  ;;  %v321_v53 = vld [vmem:[%s1015_s5 + $0xe0] sm:$0xff] }
  0x35   :  { %520 = vmatprep.subr.bf16.mxu1 %v519_v54  ;;  %v322_v54 = vld [vmem:[%s1015_s5 + $0xe8] sm:$0xff] }
  0x36   :  { %558 = vmatpush3.bf16.msra.mxu0 %v557_v49  ;;  %v563_v56 = vpack.c.bf16 %v322_v54, %v321_v53 }
  0x37   :  { %560 = vmatprep.subr.bf16.mxu0 %v559_v50 }
  0x38   :  { %522 = vmatpush1.bf16.msra.mxu1 %v521_v59  ;;  %v63_v59 = vsub.s32 0, %v62_v58 }
  0x39   :  { %524 = vmatprep.subr.bf16.mxu1 %v523_v60  ;;  %v59_v60 = vld [vmem:[%s1016_s2] sm:$0x3] }
  0x3a   :  { %562 = vmatpush3.bf16.msra.mxu0 %v561_v55  ;;  %v64_v62 = vrot.slane %v59_v60, %v63_v59  ;;  %v68_v63 = vrot.slane %v59_v60, %v67_v61  ;;  %v213_v16 = vrot.slane %v208_v15, %v63_v59 }
  0x3b   :  { %564 = vmatprep.subr.bf16.mxu0 %v563_v56 }
  0x3c   :  { %526 = vmatpush1.bf16.msra.mxu1 %v525_v1 }
  0x3d   :  { %528 = vmatprep.subr.bf16.mxu1 %v527_v2 }
  0x40   :  { %530 = vmatpush1.bf16.msra.mxu1 %v529_v7  ;;  %v306_v7 = vld [vmem:[%s1015_s5 + $0x68] sm:$0xff] }
  0x41   :  { %532 = vmatprep.subr.bf16.mxu1 %v531_v8  ;;  %v565_v8 = vpack.c.bf16 %v306_v7, %v305_v6 }
  0x43   :  { %566 = vmatpush3.bf16.msra.mxu0 %v565_v8 }
  0x44   :  { %534 = vmatpush1.bf16.msra.mxu1 %v533_v11  ;;  %v567_v11 = vpack.c.bf16 %v324_v10, %v323_v9 }
  0x45   :  { %536 = vmatprep.subr.bf16.mxu1 %v535_v14  ;;  %v569_v14 = vpack.c.bf16 %v308_v13, %v307_v12 }
  0x46   :  { %568 = vmatprep.subr.bf16.mxu0 %v567_v11 }
  0x47   :  { %570 = vmatpush3.bf16.msra.mxu0 %v569_v14 }
  0x48   :  { %538 = vmatpush1.bf16.msra.mxu1 %v537_v17  ;;  %v217_v17 = vrot.slane %v208_v15, %v67_v61 }
  0xf7   :  { %v137_v0 = vpop.f32.mrb[0].mxu0 }
  0xf8   :  { %v138_v1 = vadd.f32 %v137_v0, %v64_v62  ;;  %v139_v2 = vpop.f32.mrb[1].mxu0 }
  0xf9   :  { %v140_v3 = vadd.f32 %v139_v2, %v68_v63 }
  0xfa   :  { %v142_v5 = vmax.f32 %v138_v1, 0.0 }
  0xfb   :  { %v143_v4 = vmax.f32 %v140_v3, 0.0 }
  0xfd   :  { %284 = vmatprep.mubr.f32.mxu1 %v143_v4 }
  0xfe   :  { %285 = vmatmul.mubr.f32.vlgmr.msra.gmra.mrb[0].mxu1 %v142_v5 }
 0x1d1   :  { %v286_v18 = vpop.f32.mrb[0].mxu1 }
 0x1d2   :  { %v287_v19 = vadd.f32 %v286_v18, %v213_v16  ;;  %v288_v20 = vpop.f32.mrb[1].mxu1 }
 0x1d3   :  { %v289_v21 = vadd.f32 %v288_v20, %v217_v17 }
 0x1d4   :  { %v291_v23 = vmax.f32 %v287_v19, 0.0 }
 0x1d5   :  { %v292_v22 = vmax.f32 %v289_v21, 0.0 }
 0x1d7   :  { %396 = vmatprep.mubr.f32.mxu0 %v292_v22 }
 0x1d8   :  { %397 = vmatmul.mubr.f32.vlgmr.msra.gmra.mrb[2].mxu0 %v291_v23 }
 0x2ab   :  { %v440_v24 = vpop.f32.mrb[2].mxu0 }
 0x2ac   :  { %v441_v26 = vpop.f32.mrb[3].mxu0 }
 0x2ad   :  { %v442_v27 = vadd.f32 %v441_v26, %v440_v24 }
 0x2af   :  { %v399_v28 = vadd.f32 %v442_v27, %v407_v25 }
 0x2b1   :  { %402 = vst [vmem:[%s1019_s7] sm:$0xff] %v399_v28 }

</bundles_post_ra>
